<compile_context>
chip_gen: v7x
topology: tpu7x:2x2x1
jax: 0.10.0
libtpu: 0.0.40
codegen_flags: <defaults>
</compile_context>

<pallas_src>
import functools

import jax
import jax.numpy as jnp
from jax.experimental import pallas as pl
from jax.experimental.pallas import tpu as pltpu

LANE = 128                        # feature dims / N padded to multiples of 128
MAX_TILE = 1024                   # target tile for the A @ h aggregation
VMEM_LIMIT = 32 * 1024 * 1024     # ~8 MiB actually used at 1024 tiles; safe on v7x
H_RESIDENT_MAX_BYTES = 8 * 1024 * 1024   # keep h VMEM-resident up to this size


def _round_up(x, m):
    return ((x + m - 1) // m) * m


def _pick_tile(n_pad, max_tile=MAX_TILE):
    """Largest multiple of 128 that divides n_pad and is <= max_tile."""
    q = n_pad // LANE
    best = 1
    for d in range(1, min(q, max_tile // LANE) + 1):
        if q % d == 0:
            best = d
    return LANE * best


# ---------------------------------------------------------------------------
# Kernel 1: h = x @ W   (row-tiled; W resident; stores bf16 for the MXU feed)
# ---------------------------------------------------------------------------
def xw_kernel(x_ref, w_ref, h_ref):
    # f32 matmul (negligible cost: N x F_in x F_out); bf16 store halves the h
    # HBM round-trip and gives the aggregation a bf16 MXU operand.
    h_ref[...] = jnp.dot(x_ref[...], w_ref[...],
                         preferred_element_type=jnp.float32).astype(h_ref.dtype)


# ---------------------------------------------------------------------------
# Kernel 2: out = A @ h + b, then relu / log_softmax
# grid = (row_tiles [parallel], k_tiles [arbitrary]); acc_ref is f32 VMEM scratch.
# A and h are bf16 MXU operands; accumulation is f32.
# ---------------------------------------------------------------------------
def aggregate_kernel(a_ref, h_ref, b_ref, o_ref, acc_ref, *,
                     activation, f_out_valid, tk, h_resident):
    k = pl.program_id(1)

    @pl.when(k == 0)
    def _init():
        acc_ref[...] = jnp.zeros_like(acc_ref)

    if h_resident:
        # h is VMEM-resident (DMA'd once for the whole grid); slice the k-chunk.
        off = pl.multiple_of(k * tk, tk)
        h_blk = h_ref[pl.ds(off, tk), :]
    else:
        h_blk = h_ref[...]

    # bf16 x bf16 on the MXU, f32 accumulation.
    acc_ref[...] += jnp.dot(a_ref[...], h_blk,
                            preferred_element_type=jnp.float32)

    @pl.when(k == pl.num_programs(1) - 1)
    def _finalize():
        out = acc_ref[...] + b_ref[...]          # bias once, in the epilogue
        if activation == "relu":
            out = jnp.maximum(out, 0.0)
        elif activation == "log_softmax":
            # mask padded feature columns so they don't contaminate the reduction
            if f_out_valid < out.shape[-1]:
                cols = jax.lax.broadcasted_iota(jnp.int32, out.shape, 1)
                out = jnp.where(cols < f_out_valid, out, -jnp.inf)
            m = jnp.max(out, axis=-1, keepdims=True)
            s = out - m
            lse = jnp.log(jnp.sum(jnp.exp(s), axis=-1, keepdims=True))
            out = s - lse
        o_ref[...] = out.astype(o_ref.dtype)


# ---------------------------------------------------------------------------
# One (padded) GCN layer: two pallas_calls.
# ---------------------------------------------------------------------------
def gcn_layer_padded(A_bf16, x_pad, W_pad, b_pad, activation, f_out_valid, *, tile):
    N_pad = A_bf16.shape[0]
    F_in_pad = x_pad.shape[1]
    F_out_pad = W_pad.shape[1]

    # ---- h = x @ W (hoisted out of the A reduction; bf16 output) ----
    h = pl.pallas_call(
        xw_kernel,
        out_shape=jax.ShapeDtypeStruct((N_pad, F_out_pad), jnp.bfloat16),
        grid=(N_pad // tile,),
        in_specs=[
            pl.BlockSpec((tile, F_in_pad), lambda i: (i, 0)),
            pl.BlockSpec((F_in_pad, F_out_pad), lambda i: (0, 0)),
        ],
        out_specs=pl.BlockSpec((tile, F_out_pad), lambda i: (i, 0)),
        compiler_params=pltpu.CompilerParams(
            dimension_semantics=("parallel",),
            vmem_limit_bytes=VMEM_LIMIT),
    )(x_pad, W_pad)

    # ---- out = A @ h + b, activation ----
    h_resident = (N_pad * F_out_pad * 2) <= H_RESIDENT_MAX_BYTES
    if h_resident:
        # Full-array block, constant index_map -> DMA'd once, stays in VMEM.
        h_spec = pl.BlockSpec((N_pad, F_out_pad), lambda i, k: (0, 0))
    else:
        # Fallback: stream bf16 h tiles along the reduction axis.
        h_spec = pl.BlockSpec((tile, F_out_pad), lambda i, k: (k, 0))

    kernel = functools.partial(
        aggregate_kernel, activation=activation, f_out_valid=f_out_valid,
        tk=tile, h_resident=h_resident)

    out = pl.pallas_call(
        kernel,
        out_shape=jax.ShapeDtypeStruct((N_pad, F_out_pad), jnp.float32),
        grid=(N_pad // tile, N_pad // tile),
        in_specs=[
            pl.BlockSpec((tile, tile), lambda i, k: (i, k)),      # A tile (bf16)
            h_spec,                                               # h (bf16)
            pl.BlockSpec((1, F_out_pad), lambda i, k: (0, 0)),    # bias
        ],
        out_specs=pl.BlockSpec((tile, F_out_pad), lambda i, k: (i, 0)),
        scratch_shapes=[pltpu.VMEM((tile, F_out_pad), jnp.float32)],
        compiler_params=pltpu.CompilerParams(
            dimension_semantics=("parallel", "arbitrary"),
            vmem_limit_bytes=VMEM_LIMIT),
    )(A_bf16, h, b_pad)
    return out


# ---------------------------------------------------------------------------
# Full forward (eval mode: dropout is identity).
# ---------------------------------------------------------------------------
def gcn_forward(x, edge_index, params):
    N, F_in = x.shape
    row, col = edge_index
    num_layers = len(params)
    F_out_final = params[-1][0].shape[1]

    N_pad = _round_up(N, LANE)
    tile = _pick_tile(N_pad)

    # Dense adjacency, built once per forward directly at its padded shape and
    # in its storage dtype (bf16 is exact for edge multiplicities <= 256).
    A = jnp.zeros((N_pad, N_pad), jnp.bfloat16).at[row, col].add(
        jnp.ones(row.shape, jnp.bfloat16))

    F_in_pad = _round_up(F_in, LANE)
    h = jnp.pad(x.astype(jnp.float32), ((0, N_pad - N), (0, F_in_pad - F_in)))

    for i, (W, b) in enumerate(params):
        f_in, f_out = W.shape
        f_in_pad = _round_up(f_in, LANE)
        f_out_pad = _round_up(f_out, LANE)
        W_pad = jnp.pad(W.astype(jnp.float32),
                        ((0, f_in_pad - f_in), (0, f_out_pad - f_out)))
        b_pad = jnp.pad(b.astype(jnp.float32).reshape(1, -1),
                        ((0, 0), (0, f_out_pad - f_out)))
        act = "relu" if i != num_layers - 1 else "log_softmax"
        h = gcn_layer_padded(A, h, W_pad, b_pad, act, f_out, tile=tile)

    return h[:N, :F_out_final]


def gcn_reference(x, edge_index, params):
    """Pure-JAX reference mirroring the PyTorch forward (eval mode)."""
    row, col = edge_index
    num_layers = len(params)
    for i, (W, b) in enumerate(params):
        h = x @ W
        out = jnp.zeros_like(h).at[row].add(h[col]) + b
        if i != num_layers - 1:
            out = jax.nn.relu(out)
        else:
            out = jax.nn.log_softmax(out, axis=1)
        x = out
    return x


if __name__ == "__main__":
    # Small shapes consistent with the module: 3-layer GCN.
    N = 8            # nodes
    E = 24           # edges
    in_channels = 16
    hidden_channels = 32
    out_channels = 8
    num_layers = 3

    key = jax.random.PRNGKey(0)
    kx, kr, kc, kw = jax.random.split(key, 4)

    x = jax.random.normal(kx, (N, in_channels), dtype=jnp.float32)
    row = jax.random.randint(kr, (E,), 0, N, dtype=jnp.int32)
    col = jax.random.randint(kc, (E,), 0, N, dtype=jnp.int32)
    edge_index = (row, col)

    # Deterministic parameter init (shapes from GCNLayer.__init__).
    dims = [in_channels] + [hidden_channels] * (num_layers - 1) + [out_channels]
    params = []
    wkeys = jax.random.split(kw, num_layers)
    for li in range(num_layers):
        f_in, f_out = dims[li], dims[li + 1]
        W = 0.1 * jax.random.normal(wkeys[li], (f_in, f_out), dtype=jnp.float32)
        b = jnp.full((f_out,), 0.01, dtype=jnp.float32)
        params.append((W, b))

    fwd = jax.jit(gcn_forward)
    out = fwd(x, edge_index, params)
    out = jax.block_until_ready(out)

    ref = gcn_reference(x, edge_index, params)
    assert out.shape == (N, out_channels)
    # bf16 h operand on the MXU adds ~1e-3 relative rounding (f32 accumulation),
    # so the tolerance is loosened vs. the pure-f32 path.
    assert jnp.allclose(out, ref, atol=2e-2, rtol=2e-2), "mismatch vs reference"

    print("KERNEL_OK")
</pallas_src>

<mosaic_0001>
module attributes {stable_mosaic.version = 11 : i64} {
  func.func @xw_kernel(%arg0: i32, %arg1: memref<128x128xf32, #tpu.memory_space<vmem>>, %arg2: memref<128x128xf32, #tpu.memory_space<vmem>>, %arg3: memref<128x128xbf16, #tpu.memory_space<vmem>>) attributes {dimension_semantics = [#tpu.dimension_semantics<parallel>], iteration_bounds = array<i64: 1>, scalar_prefetch = 0 : i64, scratch_operands = 0 : i64, tpu.core_type = #tpu.core_type<tc>, window_params = [{transform_indices = @transform_0, window_bounds = array<i64: 128, 128>}, {pipeline_mode = #tpu.pipeline_mode<synchronous>, transform_indices = @transform_1, window_bounds = array<i64: 128, 128>}, {transform_indices = @transform_2, window_bounds = array<i64: 128, 128>}]} {
    %c0 = arith.constant 0 : index
    %c0_0 = arith.constant 0 : index
    %0 = vector.load %arg1[%c0, %c0_0] : memref<128x128xf32, #tpu.memory_space<vmem>>, vector<128x128xf32>
    %c0_1 = arith.constant 0 : index
    %c0_2 = arith.constant 0 : index
    %1 = vector.load %arg2[%c0_1, %c0_2] : memref<128x128xf32, #tpu.memory_space<vmem>>, vector<128x128xf32>
    %cst = arith.constant dense<0.000000e+00> : vector<128x128xf32>
    %2 = tpu.matmul %0, %1, %cst {dimension_numbers = #tpu.dot_dimension_numbers<[1], [0], [0], [1], [0, 0, 1, 1], [], []>} : vector<128x128xf32>, vector<128x128xf32>, vector<128x128xf32> -> vector<128x128xf32>
    %3 = arith.truncf %2 : vector<128x128xf32> to vector<128x128xbf16>
    %c0_3 = arith.constant 0 : index
    %c0_4 = arith.constant 0 : index
    %4 = vector.load %arg3[%c0_3, %c0_4] : memref<128x128xbf16, #tpu.memory_space<vmem>>, vector<128x128xbf16>
    tpu.vector_store %arg3[%c0_3, %c0_4], %3 {strides = array<i32>} : memref<128x128xbf16, #tpu.memory_space<vmem>>, vector<128x128xbf16>,
    return
  }
  func.func @transform_0(%arg0: i32) -> (i32, i32) {
    %c0_i32 = arith.constant 0 : i32
    %c0_i32_0 = arith.constant 0 : i32
    return %arg0, %c0_i32 : i32, i32
  }
  func.func @transform_1(%arg0: i32) -> (i32, i32) {
    %c0_i32 = arith.constant 0 : i32
    %c0_i32_0 = arith.constant 0 : i32
    %c0_i32_1 = arith.constant 0 : i32
    return %c0_i32, %c0_i32_0 : i32, i32
  }
  func.func @transform_2(%arg0: i32) -> (i32, i32) {
    %c0_i32 = arith.constant 0 : i32
    %c0_i32_0 = arith.constant 0 : i32
    return %arg0, %c0_i32 : i32, i32
  }
}

module attributes {stable_mosaic.version = 11 : i64} {
  func.func @aggregate_kernel(%arg0: i32, %arg1: i32, %arg2: memref<128x128xbf16, #tpu.memory_space<vmem>>, %arg3: memref<128x128xbf16, #tpu.memory_space<vmem>>, %arg4: memref<1x128xf32, #tpu.memory_space<vmem>>, %arg5: memref<128x128xf32, #tpu.memory_space<vmem>>, %arg6: memref<128x128xf32, #tpu.memory_space<vmem>>) attributes {dimension_semantics = [#tpu.dimension_semantics<parallel>, #tpu.dimension_semantics<arbitrary>], iteration_bounds = array<i64: 1, 1>, scalar_prefetch = 0 : i64, scratch_operands = 1 : i64, tpu.core_type = #tpu.core_type<tc>, window_params = [{transform_indices = @transform_0, window_bounds = array<i64: 128, 128>}, {pipeline_mode = #tpu.pipeline_mode<synchronous>, transform_indices = @transform_1, window_bounds = array<i64: 128, 128>}, {pipeline_mode = #tpu.pipeline_mode<synchronous>, transform_indices = @transform_2, window_bounds = array<i64: 1, 128>}, {transform_indices = @transform_3, window_bounds = array<i64: 128, 128>}]} {
    %c0_i32 = arith.constant 0 : i32
    %0 = arith.cmpi eq, %arg1, %c0_i32 : i32
    %1 = arith.extui %0 : i1 to i32
    %c0_i32_0 = arith.constant 0 : i32
    %2 = arith.cmpi ne, %1, %c0_i32_0 : i32
    scf.if %2 {
      %cst_9 = arith.constant 0.000000e+00 : f32
      %15 = vector.broadcast %cst_9 : f32 to vector<128x128xf32>
      %c0_10 = arith.constant 0 : index
      %c0_11 = arith.constant 0 : index
      %16 = vector.load %arg6[%c0_10, %c0_11] : memref<128x128xf32, #tpu.memory_space<vmem>>, vector<128x128xf32>
      tpu.vector_store %arg6[%c0_10, %c0_11], %15 {strides = array<i32>} : memref<128x128xf32, #tpu.memory_space<vmem>>, vector<128x128xf32>,
    } else {
    }
    %c128_i32 = arith.constant 128 : i32
    %3 = arith.muli %arg1, %c128_i32 : i32
    %4 = tpu.assume_multiple %3, 128 : i32
    %5 = arith.index_cast %4 : i32 to index
    %c0 = arith.constant 0 : index
    %6 = vector.load %arg3[%5, %c0] : memref<128x128xbf16, #tpu.memory_space<vmem>>, vector<128x128xbf16>
    %c0_1 = arith.constant 0 : index
    %c0_2 = arith.constant 0 : index
    %7 = vector.load %arg6[%c0_1, %c0_2] : memref<128x128xf32, #tpu.memory_space<vmem>>, vector<128x128xf32>
    %c0_3 = arith.constant 0 : index
    %c0_4 = arith.constant 0 : index
    %8 = vector.load %arg2[%c0_3, %c0_4] : memref<128x128xbf16, #tpu.memory_space<vmem>>, vector<128x128xbf16>
    %cst = arith.constant dense<0.000000e+00> : vector<128x128xf32>
    %9 = tpu.matmul %8, %6, %cst {dimension_numbers = #tpu.dot_dimension_numbers<[1], [0], [0], [1], [0, 0, 1, 1], [], []>} : vector<128x128xbf16>, vector<128x128xbf16>, vector<128x128xf32> -> vector<128x128xf32>
    %10 = arith.addf %7, %9 : vector<128x128xf32>
    %c0_5 = arith.constant 0 : index
    %c0_6 = arith.constant 0 : index
    %11 = vector.load %arg6[%c0_5, %c0_6] : memref<128x128xf32, #tpu.memory_space<vmem>>, vector<128x128xf32>
    tpu.vector_store %arg6[%c0_5, %c0_6], %10 {strides = array<i32>} : memref<128x128xf32, #tpu.memory_space<vmem>>, vector<128x128xf32>,
    %c0_i32_7 = arith.constant 0 : i32
    %12 = arith.cmpi eq, %arg1, %c0_i32_7 : i32
    %13 = arith.extui %12 : i1 to i32
    %c0_i32_8 = arith.constant 0 : i32
    %14 = arith.cmpi ne, %13, %c0_i32_8 : i32
    scf.if %14 {
      %c0_9 = arith.constant 0 : index
      %c0_10 = arith.constant 0 : index
      %15 = vector.load %arg6[%c0_9, %c0_10] : memref<128x128xf32, #tpu.memory_space<vmem>>, vector<128x128xf32>
      %c0_11 = arith.constant 0 : index
      %c0_12 = arith.constant 0 : index
      %16 = vector.load %arg4[%c0_11, %c0_12] : memref<1x128xf32, #tpu.memory_space<vmem>>, vector<1x128xf32>
      %17 = vector.broadcast %16 : vector<1x128xf32> to vector<128x128xf32>
      %18 = arith.addf %15, %17 : vector<128x128xf32>
      %cst_13 = arith.constant 0.000000e+00 : f32
      %19 = vector.broadcast %cst_13 : f32 to vector<128x128xf32>
      %20 = arith.maximumf %18, %19 : vector<128x128xf32>
      %c0_14 = arith.constant 0 : index
      %c0_15 = arith.constant 0 : index
      %21 = vector.load %arg5[%c0_14, %c0_15] : memref<128x128xf32, #tpu.memory_space<vmem>>, vector<128x128xf32>
      tpu.vector_store %arg5[%c0_14, %c0_15], %20 {strides = array<i32>} : memref<128x128xf32, #tpu.memory_space<vmem>>, vector<128x128xf32>,
    } else {
    }
    return
  }
  func.func @transform_0(%arg0: i32, %arg1: i32) -> (i32, i32) {
    %c0_i32 = arith.constant 0 : i32
    return %arg0, %arg1 : i32, i32
  }
  func.func @transform_1(%arg0: i32, %arg1: i32) -> (i32, i32) {
    %c0_i32 = arith.constant 0 : i32
    %c0_i32_0 = arith.constant 0 : i32
    %c0_i32_1 = arith.constant 0 : i32
    return %c0_i32, %c0_i32_0 : i32, i32
  }
  func.func @transform_2(%arg0: i32, %arg1: i32) -> (i32, i32) {
    %c0_i32 = arith.constant 0 : i32
    %c0_i32_0 = arith.constant 0 : i32
    %c0_i32_1 = arith.constant 0 : i32
    return %c0_i32, %c0_i32_0 : i32, i32
  }
  func.func @transform_3(%arg0: i32, %arg1: i32) -> (i32, i32) {
    %c0_i32 = arith.constant 0 : i32
    %c0_i32_0 = arith.constant 0 : i32
    return %arg0, %c0_i32 : i32, i32
  }
}

module attributes {stable_mosaic.version = 11 : i64} {
  func.func @aggregate_kernel(%arg0: i32, %arg1: i32, %arg2: memref<128x128xbf16, #tpu.memory_space<vmem>>, %arg3: memref<128x128xbf16, #tpu.memory_space<vmem>>, %arg4: memref<1x128xf32, #tpu.memory_space<vmem>>, %arg5: memref<128x128xf32, #tpu.memory_space<vmem>>, %arg6: memref<128x128xf32, #tpu.memory_space<vmem>>) attributes {dimension_semantics = [#tpu.dimension_semantics<parallel>, #tpu.dimension_semantics<arbitrary>], iteration_bounds = array<i64: 1, 1>, scalar_prefetch = 0 : i64, scratch_operands = 1 : i64, tpu.core_type = #tpu.core_type<tc>, window_params = [{transform_indices = @transform_0, window_bounds = array<i64: 128, 128>}, {pipeline_mode = #tpu.pipeline_mode<synchronous>, transform_indices = @transform_1, window_bounds = array<i64: 128, 128>}, {pipeline_mode = #tpu.pipeline_mode<synchronous>, transform_indices = @transform_2, window_bounds = array<i64: 1, 128>}, {transform_indices = @transform_3, window_bounds = array<i64: 128, 128>}]} {
    %c0_i32 = arith.constant 0 : i32
    %0 = arith.cmpi eq, %arg1, %c0_i32 : i32
    %1 = arith.extui %0 : i1 to i32
    %c0_i32_0 = arith.constant 0 : i32
    %2 = arith.cmpi ne, %1, %c0_i32_0 : i32
    scf.if %2 {
      %cst_9 = arith.constant 0.000000e+00 : f32
      %15 = vector.broadcast %cst_9 : f32 to vector<128x128xf32>
      %c0_10 = arith.constant 0 : index
      %c0_11 = arith.constant 0 : index
      %16 = vector.load %arg6[%c0_10, %c0_11] : memref<128x128xf32, #tpu.memory_space<vmem>>, vector<128x128xf32>
      tpu.vector_store %arg6[%c0_10, %c0_11], %15 {strides = array<i32>} : memref<128x128xf32, #tpu.memory_space<vmem>>, vector<128x128xf32>,
    } else {
    }
    %c128_i32 = arith.constant 128 : i32
    %3 = arith.muli %arg1, %c128_i32 : i32
    %4 = tpu.assume_multiple %3, 128 : i32
    %5 = arith.index_cast %4 : i32 to index
    %c0 = arith.constant 0 : index
    %6 = vector.load %arg3[%5, %c0] : memref<128x128xbf16, #tpu.memory_space<vmem>>, vector<128x128xbf16>
    %c0_1 = arith.constant 0 : index
    %c0_2 = arith.constant 0 : index
    %7 = vector.load %arg6[%c0_1, %c0_2] : memref<128x128xf32, #tpu.memory_space<vmem>>, vector<128x128xf32>
    %c0_3 = arith.constant 0 : index
    %c0_4 = arith.constant 0 : index
    %8 = vector.load %arg2[%c0_3, %c0_4] : memref<128x128xbf16, #tpu.memory_space<vmem>>, vector<128x128xbf16>
    %cst = arith.constant dense<0.000000e+00> : vector<128x128xf32>
    %9 = tpu.matmul %8, %6, %cst {dimension_numbers = #tpu.dot_dimension_numbers<[1], [0], [0], [1], [0, 0, 1, 1], [], []>} : vector<128x128xbf16>, vector<128x128xbf16>, vector<128x128xf32> -> vector<128x128xf32>
    %10 = arith.addf %7, %9 : vector<128x128xf32>
    %c0_5 = arith.constant 0 : index
    %c0_6 = arith.constant 0 : index
    %11 = vector.load %arg6[%c0_5, %c0_6] : memref<128x128xf32, #tpu.memory_space<vmem>>, vector<128x128xf32>
    tpu.vector_store %arg6[%c0_5, %c0_6], %10 {strides = array<i32>} : memref<128x128xf32, #tpu.memory_space<vmem>>, vector<128x128xf32>,
    %c0_i32_7 = arith.constant 0 : i32
    %12 = arith.cmpi eq, %arg1, %c0_i32_7 : i32
    %13 = arith.extui %12 : i1 to i32
    %c0_i32_8 = arith.constant 0 : i32
    %14 = arith.cmpi ne, %13, %c0_i32_8 : i32
    scf.if %14 {
      %c0_9 = arith.constant 0 : index
      %c0_10 = arith.constant 0 : index
      %15 = vector.load %arg6[%c0_9, %c0_10] : memref<128x128xf32, #tpu.memory_space<vmem>>, vector<128x128xf32>
      %c0_11 = arith.constant 0 : index
      %c0_12 = arith.constant 0 : index
      %16 = vector.load %arg4[%c0_11, %c0_12] : memref<1x128xf32, #tpu.memory_space<vmem>>, vector<1x128xf32>
      %17 = vector.broadcast %16 : vector<1x128xf32> to vector<128x128xf32>
      %18 = arith.addf %15, %17 : vector<128x128xf32>
      %19 = tpu.iota {dimensions = array<i32: 1>} : vector<128x128xi32>
      %c8_i32 = arith.constant 8 : i32
      %20 = vector.broadcast %c8_i32 : i32 to vector<128x128xi32>
      %21 = arith.cmpi slt, %19, %20 : vector<128x128xi32>
      %cst_13 = arith.constant 0xFF800000 : f32
      %22 = vector.broadcast %cst_13 : f32 to vector<128x128xf32>
      %23 = arith.select %21, %18, %22 : vector<128x128xi1>, vector<128x128xf32>
      %cst_14 = arith.constant dense<0xFF800000> : vector<128xf32>
      %24 = vector.multi_reduction <maximumf>, %23, %cst_14 [1] : vector<128x128xf32> to vector<128xf32>
      %25 = vector.shape_cast %24 : vector<128xf32> to vector<128x1xf32>
      %26 = vector.broadcast %25 : vector<128x1xf32> to vector<128x128xf32>
      %27 = arith.subf %23, %26 : vector<128x128xf32>
      %28 = math.exp %27 : vector<128x128xf32>
      %cst_15 = arith.constant dense<0.000000e+00> : vector<128xf32>
      %29 = vector.multi_reduction <add>, %28, %cst_15 [1] : vector<128x128xf32> to vector<128xf32>
      %30 = vector.shape_cast %29 : vector<128xf32> to vector<128x1xf32>
      %31 = math.log %30 : vector<128x1xf32>
      %32 = vector.broadcast %31 : vector<128x1xf32> to vector<128x128xf32>
      %33 = arith.subf %27, %32 : vector<128x128xf32>
      %c0_16 = arith.constant 0 : index
      %c0_17 = arith.constant 0 : index
      %34 = vector.load %arg5[%c0_16, %c0_17] : memref<128x128xf32, #tpu.memory_space<vmem>>, vector<128x128xf32>
      tpu.vector_store %arg5[%c0_16, %c0_17], %33 {strides = array<i32>} : memref<128x128xf32, #tpu.memory_space<vmem>>, vector<128x128xf32>,
    } else {
    }
    return
  }
  func.func @transform_0(%arg0: i32, %arg1: i32) -> (i32, i32) {
    %c0_i32 = arith.constant 0 : i32
    return %arg0, %arg1 : i32, i32
  }
  func.func @transform_1(%arg0: i32, %arg1: i32) -> (i32, i32) {
    %c0_i32 = arith.constant 0 : i32
    %c0_i32_0 = arith.constant 0 : i32
    %c0_i32_1 = arith.constant 0 : i32
    return %c0_i32, %c0_i32_0 : i32, i32
  }
  func.func @transform_2(%arg0: i32, %arg1: i32) -> (i32, i32) {
    %c0_i32 = arith.constant 0 : i32
    %c0_i32_0 = arith.constant 0 : i32
    %c0_i32_1 = arith.constant 0 : i32
    return %c0_i32, %c0_i32_0 : i32, i32
  }
  func.func @transform_3(%arg0: i32, %arg1: i32) -> (i32, i32) {
    %c0_i32 = arith.constant 0 : i32
    %c0_i32_0 = arith.constant 0 : i32
    return %arg0, %c0_i32 : i32, i32
  }
}

</mosaic_0001>

<bundles_post_ra>
// kernel: gcn_forward.6
= control target key start
LH: loop header
LB: loop body
LE: loop exit
PB: predicated region body
PF: predicated region fallthrough
CT: control target
= control target key end

     0   :  { %s622_s1 = inlined_call_operand.vmem [shape: f32[128,128], index: 1, kind: input, shape index: {}]   ;;  %s623_s0 = inlined_call_operand.vmem [shape: f32[128,128], index: 0, kind: input, shape index: {}]   ;;  %s624_s2 = inlined_call_operand.vmem [shape: bf16[128,128], index: 2, kind: output, shape index: {}]  }
   0x1   :  { %v27_v0 = vld [vmem:[%s622_s1] sm:$0xff]  ;;  %v28_v1 = vld [vmem:[%s622_s1 + $0x8] sm:$0xff]  ;;  %v29_v2 = vld [vmem:[%s622_s1 + $0x10] sm:$0xff] }
   0x2   :  { %v439_v3 = vpack.c.bf16 %v28_v1, %v27_v0  ;;  %v30_v4 = vld [vmem:[%s622_s1 + $0x18] sm:$0xff]  ;;  %v31_v6 = vld [vmem:[%s622_s1 + $0x20] sm:$0xff]  ;;  %v32_v7 = vld [vmem:[%s622_s1 + $0x28] sm:$0xff] }
   0x3   :  { %v443_v5 = vpack.c.bf16 %v30_v4, %v29_v2  ;;  %v447_v8 = vpack.c.bf16 %v32_v7, %v31_v6  ;;  %v11_v9 = vld [vmem:[%s623_s0] sm:$0xff]  ;;  %v33_v11 = vld [vmem:[%s622_s1 + $0x30] sm:$0xff]  ;;  %v34_v12 = vld [vmem:[%s622_s1 + $0x38] sm:$0xff] }
   0x4   :  { %440 = vmatprep.subr.bf16.mxu0 %v439_v3  ;;  %471 = vmatprep.subr.bf16.mxu1 %v439_v3  ;;  %v19_v10 = vld [vmem:[%s623_s0 + $0x40] sm:$0xff]  ;;  %v451_v13 = vpack.c.bf16 %v34_v12, %v33_v11  ;;  %v36_v15 = vld [vmem:[%s622_s1 + $0x48] sm:$0xff]  ;;  %v37_v17 = vld [vmem:[%s622_s1 + $0x50] sm:$0xff] }
   0x5   :  { %442 = vmatpush3.bf16.msra.mxu0 %v439_v3  ;;  %479 = vmatpush3.bf16.msra.mxu1 %v439_v3  ;;  %v35_v14 = vld [vmem:[%s622_s1 + $0x40] sm:$0xff]  ;;  %v38_v18 = vld [vmem:[%s622_s1 + $0x58] sm:$0xff]  ;;  %v40_v21 = vld [vmem:[%s622_s1 + $0x68] sm:$0xff] }
   0x6   :  { %444 = vmatprep.subr.bf16.mxu0 %v443_v5  ;;  %472 = vmatprep.subr.bf16.mxu1 %v443_v5  ;;  %v455_v16 = vpack.c.bf16 %v36_v15, %v35_v14  ;;  %v459_v19 = vpack.c.bf16 %v38_v18, %v37_v17  ;;  %v39_v20 = vld [vmem:[%s622_s1 + $0x60] sm:$0xff]  ;;  %v41_v23 = vld [vmem:[%s622_s1 + $0x70] sm:$0xff]  ;;  %v42_v24 = vld [vmem:[%s622_s1 + $0x78] sm:$0xff] }
   0x7   :  { %415 = vmatprep.mubr.f32.mxu0 %v11_v9  ;;  %427 = vmatprep.mubr.f32.mxu1 %v19_v10  ;;  %v463_v22 = vpack.c.bf16 %v40_v21, %v39_v20  ;;  %v467_v25 = vpack.c.bf16 %v42_v24, %v41_v23  ;;  %v12_v26 = vld [vmem:[%s623_s0 + $0x8] sm:$0xff]  ;;  %v13_v28 = vld [vmem:[%s623_s0 + $0x10] sm:$0xff]  ;;  %v14_v30 = vld [vmem:[%s623_s0 + $0x18] sm:$0xff] }
   0x8   :  { %v20_v27 = vld [vmem:[%s623_s0 + $0x48] sm:$0xff]  ;;  %v21_v29 = vld [vmem:[%s623_s0 + $0x50] sm:$0xff]  ;;  %v22_v31 = vld [vmem:[%s623_s0 + $0x58] sm:$0xff] }
   0x9   :  { %446 = vmatpush3.bf16.msra.mxu0 %v443_v5  ;;  %480 = vmatpush3.bf16.msra.mxu1 %v443_v5  ;;  %v15_v32 = vld [vmem:[%s623_s0 + $0x20] sm:$0xff]  ;;  %v16_v34 = vld [vmem:[%s623_s0 + $0x28] sm:$0xff]  ;;  %v17_v36 = vld [vmem:[%s623_s0 + $0x30] sm:$0xff] }
   0xa   :  { %448 = vmatprep.subr.bf16.mxu0 %v447_v8  ;;  %473 = vmatprep.subr.bf16.mxu1 %v447_v8  ;;  %v23_v33 = vld [vmem:[%s623_s0 + $0x60] sm:$0xff]  ;;  %v24_v35 = vld [vmem:[%s623_s0 + $0x68] sm:$0xff]  ;;  %v25_v37 = vld [vmem:[%s623_s0 + $0x70] sm:$0xff] }
   0xb   :  { %v18_v38 = vld [vmem:[%s623_s0 + $0x38] sm:$0xff] }
   0xc   :  { %v26_v39 = vld [vmem:[%s623_s0 + $0x78] sm:$0xff] }
   0xd   :  { %450 = vmatpush3.bf16.msra.mxu0 %v447_v8  ;;  %481 = vmatpush3.bf16.msra.mxu1 %v447_v8 }
   0xe   :  { %452 = vmatprep.subr.bf16.mxu0 %v451_v13  ;;  %474 = vmatprep.subr.bf16.mxu1 %v451_v13 }
  0x11   :  { %454 = vmatpush3.bf16.msra.mxu0 %v451_v13  ;;  %482 = vmatpush3.bf16.msra.mxu1 %v451_v13 }
  0x12   :  { %456 = vmatprep.subr.bf16.mxu0 %v455_v16  ;;  %475 = vmatprep.subr.bf16.mxu1 %v455_v16 }
  0x15   :  { %458 = vmatpush3.bf16.msra.mxu0 %v455_v16  ;;  %483 = vmatpush3.bf16.msra.mxu1 %v455_v16 }
  0x16   :  { %460 = vmatprep.subr.bf16.mxu0 %v459_v19  ;;  %476 = vmatprep.subr.bf16.mxu1 %v459_v19 }
  0x19   :  { %462 = vmatpush3.bf16.msra.mxu0 %v459_v19  ;;  %484 = vmatpush3.bf16.msra.mxu1 %v459_v19 }
  0x1a   :  { %464 = vmatprep.subr.bf16.mxu0 %v463_v22  ;;  %477 = vmatprep.subr.bf16.mxu1 %v463_v22 }
  0x1d   :  { %466 = vmatpush3.bf16.msra.mxu0 %v463_v22  ;;  %485 = vmatpush3.bf16.msra.mxu1 %v463_v22 }
  0x1e   :  { %468 = vmatprep.subr.bf16.mxu0 %v467_v25  ;;  %478 = vmatprep.subr.bf16.mxu1 %v467_v25 }
  0x21   :  { %470 = vmatpush3.bf16.msra.mxu0 %v467_v25  ;;  %486 = vmatpush3.bf16.msra.mxu1 %v467_v25 }
  0x24   :  { %416 = vmatmul.mubr.f32.vlgmr.msra.gmra.mrb[0].mxu0 %v12_v26  ;;  %428 = vmatmul.mubr.f32.vlgmr.msra.gmra.mrb[0].mxu1 %v20_v27 }
  0x25   :  { %418 = vmatprep.mubr.f32.mxu0 %v13_v28  ;;  %430 = vmatprep.mubr.f32.mxu1 %v21_v29 }
  0x28   :  { %419 = vmatmul.mubr.f32.gmra.mrb[2].mxu0 %v14_v30  ;;  %431 = vmatmul.mubr.f32.gmra.mrb[2].mxu1 %v22_v31 }
  0x29   :  { %421 = vmatprep.mubr.f32.mxu0 %v15_v32  ;;  %433 = vmatprep.mubr.f32.mxu1 %v23_v33 }
  0x2c   :  { %422 = vmatmul.mubr.f32.gmra.mrb[4].mxu0 %v16_v34  ;;  %434 = vmatmul.mubr.f32.gmra.mrb[4].mxu1 %v24_v35 }
  0x2d   :  { %424 = vmatprep.mubr.f32.mxu0 %v17_v36  ;;  %436 = vmatprep.mubr.f32.mxu1 %v25_v37 }
  0x30   :  { %425 = vmatmul.mubr.f32.gmra.mrb[6].mxu0 %v18_v38  ;;  %437 = vmatmul.mubr.f32.gmra.mrb[6].mxu1 %v26_v39 }
  0xf7   :  { %v417_v40 = vpop.f32.mrb[0].mxu0  ;;  %v429_v41 = vpop.f32.mrb[0].mxu1 }
  0xf8   :  { %v109_v42 = vpop.f32.mrb[1].mxu0  ;;  %v149_v43 = vpop.f32.mrb[1].mxu1 }
  0xf9   :  { %v307_v44 = vpack.c.bf16 %v417_v40, %v109_v42  ;;  %v327_v45 = vpack.c.bf16 %v429_v41, %v149_v43 }
  0xfb   :  { %308 = vst [vmem:[%s624_s2] sm:$0xff] %v307_v44   ;;  %347 = vst [vmem:[%s624_s2 + $0x20] sm:$0xff] %v327_v45   ;;  %v420_v46 = vpop.f32.mrb[2].mxu0  ;;  %v432_v47 = vpop.f32.mrb[2].mxu1 }
  0xfc   :  { %v119_v48 = vpop.f32.mrb[3].mxu0  ;;  %v159_v49 = vpop.f32.mrb[3].mxu1 }
  0xfd   :  { %v312_v50 = vpack.c.bf16 %v420_v46, %v119_v48  ;;  %v332_v51 = vpack.c.bf16 %v432_v47, %v159_v49 }
  0xff   :  { %344 = vst [vmem:[%s624_s2 + $0x8] sm:$0xff] %v312_v50   ;;  %348 = vst [vmem:[%s624_s2 + $0x28] sm:$0xff] %v332_v51   ;;  %v423_v52 = vpop.f32.mrb[4].mxu0  ;;  %v435_v53 = vpop.f32.mrb[4].mxu1 }
 0x100   :  { %v129_v54 = vpop.f32.mrb[5].mxu0  ;;  %v169_v55 = vpop.f32.mrb[5].mxu1 }
 0x101   :  { %v317_v56 = vpack.c.bf16 %v423_v52, %v129_v54  ;;  %v337_v57 = vpack.c.bf16 %v435_v53, %v169_v55 }
 0x103   :  { %345 = vst [vmem:[%s624_s2 + $0x10] sm:$0xff] %v317_v56   ;;  %349 = vst [vmem:[%s624_s2 + $0x30] sm:$0xff] %v337_v57   ;;  %v426_v58 = vpop.f32.mrb[6].mxu0  ;;  %v438_v59 = vpop.f32.mrb[6].mxu1 }
 0x104   :  { %v139_v60 = vpop.f32.mrb[7].mxu0  ;;  %v179_v61 = vpop.f32.mrb[7].mxu1 }
 0x105   :  { %v322_v62 = vpack.c.bf16 %v426_v58, %v139_v60  ;;  %v342_v63 = vpack.c.bf16 %v438_v59, %v179_v61 }
 0x107   :  { %346 = vst [vmem:[%s624_s2 + $0x18] sm:$0xff] %v322_v62   ;;  %350 = vst [vmem:[%s624_s2 + $0x38] sm:$0xff] %v342_v63  }

// kernel: gcn_forward.7
= control target key start
LH: loop header
LB: loop body
LE: loop exit
PB: predicated region body
PF: predicated region fallthrough
CT: control target
= control target key end

     0   :  { %s609_s1 = inlined_call_operand.vmem [shape: bf16[128,128], index: 1, kind: input, shape index: {}]   ;;  %s610_s0 = inlined_call_operand.vmem [shape: bf16[128,128], index: 0, kind: input, shape index: {}]   ;;  %s611_s2 = inlined_call_operand.vmem [shape: f32[1,128], index: 2, kind: input, shape index: {}]   ;;  %s612_s3 = inlined_call_operand.vmem [shape: f32[128,128], index: 3, kind: output, shape index: {}]  }
   0x1   :  { %v474_v0 = vld [vmem:[%s609_s1] sm:$0xff]   ;;  %v475_v1 = vld [vmem:[%s609_s1 + $0x8] sm:$0xff]   ;;  %v476_v2 = vld [vmem:[%s609_s1 + $0x10] sm:$0xff]  }
   0x2   :  { %426 = vmatprep.subr.bf16.mxu0 %v474_v0  ;;  %458 = vmatprep.subr.bf16.mxu1 %v474_v0  ;;  %v477_v3 = vld [vmem:[%s609_s1 + $0x18] sm:$0xff]   ;;  %v482_v4 = vld [vmem:[%s610_s0] sm:$0xff]   ;;  %v479_v7 = vld [vmem:[%s609_s1 + $0x28] sm:$0xff]  }
   0x3   :  { %427 = vmatpush3.bf16.msra.mxu0 %v474_v0  ;;  %466 = vmatpush3.bf16.msra.mxu1 %v474_v0  ;;  %v483_v5 = vld [vmem:[%s610_s0 + $0x20] sm:$0xff]   ;;  %v480_v8 = vld [vmem:[%s609_s1 + $0x30] sm:$0xff]   ;;  %v481_v9 = vld [vmem:[%s609_s1 + $0x38] sm:$0xff]  }
   0x4   :  { %428 = vmatprep.subr.bf16.mxu0 %v475_v1  ;;  %459 = vmatprep.subr.bf16.mxu1 %v475_v1  ;;  %v478_v6 = vld [vmem:[%s609_s1 + $0x20] sm:$0xff]   ;;  %v484_v10 = vld [vmem:[%s610_s0 + $0x8] sm:$0xff]   ;;  %v486_v12 = vld [vmem:[%s610_s0 + $0x10] sm:$0xff]  }
   0x5   :  { %442 = vmatprep.mubr.bf16.mxu0 %v482_v4  ;;  %450 = vmatprep.mubr.bf16.mxu1 %v483_v5  ;;  %v485_v11 = vld [vmem:[%s610_s0 + $0x28] sm:$0xff]   ;;  %v487_v13 = vld [vmem:[%s610_s0 + $0x30] sm:$0xff]   ;;  %v488_v14 = vld [vmem:[%s610_s0 + $0x18] sm:$0xff]  }
   0x6   :  { %v489_v15 = vld [vmem:[%s610_s0 + $0x38] sm:$0xff]   ;;  %v409_v16 = vld [vmem:[%s611_s2] ss:$0 sm:$0xff] }
   0x7   :  { %429 = vmatpush3.bf16.msra.mxu0 %v475_v1  ;;  %467 = vmatpush3.bf16.msra.mxu1 %v475_v1 }
   0x8   :  { %430 = vmatprep.subr.bf16.mxu0 %v476_v2  ;;  %460 = vmatprep.subr.bf16.mxu1 %v476_v2 }
   0xb   :  { %431 = vmatpush3.bf16.msra.mxu0 %v476_v2  ;;  %468 = vmatpush3.bf16.msra.mxu1 %v476_v2 }
   0xc   :  { %432 = vmatprep.subr.bf16.mxu0 %v477_v3  ;;  %461 = vmatprep.subr.bf16.mxu1 %v477_v3 }
   0xf   :  { %433 = vmatpush3.bf16.msra.mxu0 %v477_v3  ;;  %469 = vmatpush3.bf16.msra.mxu1 %v477_v3 }
  0x10   :  { %434 = vmatprep.subr.bf16.mxu0 %v478_v6  ;;  %462 = vmatprep.subr.bf16.mxu1 %v478_v6 }
  0x13   :  { %435 = vmatpush3.bf16.msra.mxu0 %v478_v6  ;;  %470 = vmatpush3.bf16.msra.mxu1 %v478_v6 }
  0x14   :  { %436 = vmatprep.subr.bf16.mxu0 %v479_v7  ;;  %463 = vmatprep.subr.bf16.mxu1 %v479_v7 }
  0x17   :  { %437 = vmatpush3.bf16.msra.mxu0 %v479_v7  ;;  %471 = vmatpush3.bf16.msra.mxu1 %v479_v7 }
  0x18   :  { %438 = vmatprep.subr.bf16.mxu0 %v480_v8  ;;  %464 = vmatprep.subr.bf16.mxu1 %v480_v8 }
  0x1b   :  { %439 = vmatpush3.bf16.msra.mxu0 %v480_v8  ;;  %472 = vmatpush3.bf16.msra.mxu1 %v480_v8 }
  0x1c   :  { %440 = vmatprep.subr.bf16.mxu0 %v481_v9  ;;  %465 = vmatprep.subr.bf16.mxu1 %v481_v9 }
  0x1f   :  { %441 = vmatpush3.bf16.msra.mxu0 %v481_v9  ;;  %473 = vmatpush3.bf16.msra.mxu1 %v481_v9 }
  0x22   :  { %443 = vmatmul.mubr.bf16.vlgmr.msra.gmra.mrb[0].mxu0 %v484_v10  ;;  %451 = vmatmul.mubr.bf16.vlgmr.msra.gmra.mrb[0].mxu1 %v485_v11 }
  0x23   :  { %446 = vmatprep.mubr.bf16.mxu0 %v486_v12  ;;  %454 = vmatprep.mubr.bf16.mxu1 %v487_v13 }
  0x2a   :  { %447 = vmatmul.mubr.bf16.gmra.mrb[4].mxu0 %v488_v14  ;;  %455 = vmatmul.mubr.bf16.gmra.mrb[4].mxu1 %v489_v15 }
  0xf5   :  { %v444_v17 = vpop.f32.mrb[0].mxu0  ;;  %v452_v18 = vpop.f32.mrb[0].mxu1 }
  0xf6   :  { %v341_v19 = vadd.f32 %v444_v17, %v409_v16  ;;  %v349_v20 = vadd.f32 %v452_v18, %v409_v16  ;;  %v218_v21 = vpop.f32.mrb[1].mxu0  ;;  %v250_v22 = vpop.f32.mrb[1].mxu1 }
  0xf7   :  { %v339_v23 = vadd.f32 %v409_v16, %v218_v21  ;;  %v347_v24 = vadd.f32 %v409_v16, %v250_v22  ;;  %v445_v25 = vpop.f32.mrb[2].mxu0  ;;  %v453_v26 = vpop.f32.mrb[2].mxu1 }
  0xf8   :  { %v357_v27 = vmax.f32 %v341_v19, 0.0  ;;  %v365_v28 = vmax.f32 %v349_v20, 0.0  ;;  %v342_v29 = vadd.f32 %v445_v25, %v409_v16  ;;  %v350_v30 = vadd.f32 %v453_v26, %v409_v16  ;;  %v221_v31 = vpop.f32.mrb[3].mxu0  ;;  %v253_v32 = vpop.f32.mrb[3].mxu1 }
  0xf9   :  { %v355_v33 = vmax.f32 %v339_v23, 0.0  ;;  %v363_v34 = vmax.f32 %v347_v24, 0.0  ;;  %v340_v35 = vadd.f32 %v409_v16, %v221_v31  ;;  %v348_v36 = vadd.f32 %v409_v16, %v253_v32 }
  0xfa   :  { %373 = vst [vmem:[%s612_s3 + $0x10] sm:$0xff] %v357_v27  ;;  %381 = vst [vmem:[%s612_s3 + $0x50] sm:$0xff] %v365_v28  ;;  %v358_v37 = vmax.f32 %v342_v29, 0.0  ;;  %v366_v38 = vmax.f32 %v350_v30, 0.0 }
  0xfb   :  { %371 = vst [vmem:[%s612_s3] sm:$0xff] %v355_v33  ;;  %379 = vst [vmem:[%s612_s3 + $0x40] sm:$0xff] %v363_v34  ;;  %v356_v39 = vmax.f32 %v340_v35, 0.0  ;;  %v364_v40 = vmax.f32 %v348_v36, 0.0 }
  0xfc   :  { %374 = vst [vmem:[%s612_s3 + $0x18] sm:$0xff] %v358_v37  ;;  %382 = vst [vmem:[%s612_s3 + $0x58] sm:$0xff] %v366_v38 }
  0xfd   :  { %372 = vst [vmem:[%s612_s3 + $0x8] sm:$0xff] %v356_v39  ;;  %380 = vst [vmem:[%s612_s3 + $0x48] sm:$0xff] %v364_v40  ;;  %v448_v41 = vpop.f32.mrb[4].mxu0  ;;  %v456_v42 = vpop.f32.mrb[4].mxu1 }
  0xfe   :  { %v345_v43 = vadd.f32 %v448_v41, %v409_v16  ;;  %v353_v44 = vadd.f32 %v456_v42, %v409_v16  ;;  %v234_v45 = vpop.f32.mrb[5].mxu0  ;;  %v266_v46 = vpop.f32.mrb[5].mxu1 }
  0xff   :  { %v343_v47 = vadd.f32 %v409_v16, %v234_v45  ;;  %v351_v48 = vadd.f32 %v409_v16, %v266_v46  ;;  %v449_v49 = vpop.f32.mrb[6].mxu0  ;;  %v457_v50 = vpop.f32.mrb[6].mxu1 }
 0x100   :  { %v361_v51 = vmax.f32 %v345_v43, 0.0  ;;  %v369_v52 = vmax.f32 %v353_v44, 0.0  ;;  %v346_v53 = vadd.f32 %v449_v49, %v409_v16  ;;  %v354_v54 = vadd.f32 %v457_v50, %v409_v16  ;;  %v237_v55 = vpop.f32.mrb[7].mxu0  ;;  %v269_v56 = vpop.f32.mrb[7].mxu1 }
 0x101   :  { %v359_v57 = vmax.f32 %v343_v47, 0.0  ;;  %v367_v58 = vmax.f32 %v351_v48, 0.0  ;;  %v344_v59 = vadd.f32 %v409_v16, %v237_v55  ;;  %v352_v60 = vadd.f32 %v409_v16, %v269_v56 }
 0x102   :  { %377 = vst [vmem:[%s612_s3 + $0x30] sm:$0xff] %v361_v51  ;;  %385 = vst [vmem:[%s612_s3 + $0x70] sm:$0xff] %v369_v52  ;;  %v362_v61 = vmax.f32 %v346_v53, 0.0  ;;  %v370_v62 = vmax.f32 %v354_v54, 0.0 }
 0x103   :  { %375 = vst [vmem:[%s612_s3 + $0x20] sm:$0xff] %v359_v57  ;;  %383 = vst [vmem:[%s612_s3 + $0x60] sm:$0xff] %v367_v58  ;;  %v360_v63 = vmax.f32 %v344_v59, 0.0  ;;  %v368_v0 = vmax.f32 %v352_v60, 0.0 }
 0x104   :  { %378 = vst [vmem:[%s612_s3 + $0x38] sm:$0xff] %v362_v61  ;;  %386 = vst [vmem:[%s612_s3 + $0x78] sm:$0xff] %v370_v62 }
 0x105   :  { %376 = vst [vmem:[%s612_s3 + $0x28] sm:$0xff] %v360_v63  ;;  %384 = vst [vmem:[%s612_s3 + $0x68] sm:$0xff] %v368_v0 }

// kernel: gcn_forward.11
= control target key start
LH: loop header
LB: loop body
LE: loop exit
PB: predicated region body
PF: predicated region fallthrough
CT: control target
= control target key end

     0   :  { %v355_v16 = vlaneseq  ;;  %s951_s1 = inlined_call_operand.vmem [shape: bf16[128,128], index: 1, kind: input, shape index: {}]   ;;  %s952_s0 = inlined_call_operand.vmem [shape: bf16[128,128], index: 0, kind: input, shape index: {}]   ;;  %s953_s2 = inlined_call_operand.vmem [shape: f32[1,128], index: 2, kind: input, shape index: {}]   ;;  %s954_s3 = inlined_call_operand.vmem [shape: f32[128,128], index: 3, kind: output, shape index: {}]  }
   0x1   :  { %v637_v0 = vld [vmem:[%s951_s1] sm:$0xff]   ;;  %v638_v1 = vld [vmem:[%s951_s1 + $0x8] sm:$0xff]   ;;  %v639_v2 = vld [vmem:[%s951_s1 + $0x10] sm:$0xff]  }
   0x2   :  { %589 = vmatprep.subr.bf16.mxu0 %v637_v0  ;;  %621 = vmatprep.subr.bf16.mxu1 %v637_v0  ;;  %v640_v3 = vld [vmem:[%s951_s1 + $0x18] sm:$0xff]   ;;  %v645_v4 = vld [vmem:[%s952_s0] sm:$0xff]   ;;  %v642_v7 = vld [vmem:[%s951_s1 + $0x28] sm:$0xff]   ;;  %v785_v17 = vand.u32 127, %v355_v16 }
   0x3   :  { %590 = vmatpush3.bf16.msra.mxu0 %v637_v0  ;;  %629 = vmatpush3.bf16.msra.mxu1 %v637_v0  ;;  %v646_v5 = vld [vmem:[%s952_s0 + $0x20] sm:$0xff]   ;;  %v643_v8 = vld [vmem:[%s951_s1 + $0x30] sm:$0xff]   ;;  %v644_v9 = vld [vmem:[%s951_s1 + $0x38] sm:$0xff]  }
   0x4   :  { %591 = vmatprep.subr.bf16.mxu0 %v638_v1  ;;  %622 = vmatprep.subr.bf16.mxu1 %v638_v1  ;;  %v641_v6 = vld [vmem:[%s951_s1 + $0x20] sm:$0xff]   ;;  %v647_v10 = vld [vmem:[%s952_s0 + $0x8] sm:$0xff]   ;;  %v649_v12 = vld [vmem:[%s952_s0 + $0x10] sm:$0xff]   ;;  %vm357_vm0 = vcmp.lt.s32.totalorder %v785_v17, 8 }
   0x5   :  { %605 = vmatprep.mubr.bf16.mxu0 %v645_v4  ;;  %613 = vmatprep.mubr.bf16.mxu1 %v646_v5  ;;  %v648_v11 = vld [vmem:[%s952_s0 + $0x28] sm:$0xff]   ;;  %v651_v13 = vld [vmem:[%s952_s0 + $0x30] sm:$0xff]   ;;  %v650_v14 = vld [vmem:[%s952_s0 + $0x18] sm:$0xff]  }
   0x6   :  { %v652_v15 = vld [vmem:[%s952_s0 + $0x38] sm:$0xff]   ;;  %v572_v18 = vld [vmem:[%s953_s2] ss:$0 sm:$0xff] }
   0x7   :  { %592 = vmatpush3.bf16.msra.mxu0 %v638_v1  ;;  %630 = vmatpush3.bf16.msra.mxu1 %v638_v1 }
   0x8   :  { %593 = vmatprep.subr.bf16.mxu0 %v639_v2  ;;  %623 = vmatprep.subr.bf16.mxu1 %v639_v2 }
   0xb   :  { %594 = vmatpush3.bf16.msra.mxu0 %v639_v2  ;;  %631 = vmatpush3.bf16.msra.mxu1 %v639_v2 }
   0xc   :  { %595 = vmatprep.subr.bf16.mxu0 %v640_v3  ;;  %624 = vmatprep.subr.bf16.mxu1 %v640_v3 }
   0xf   :  { %596 = vmatpush3.bf16.msra.mxu0 %v640_v3  ;;  %632 = vmatpush3.bf16.msra.mxu1 %v640_v3 }
  0x10   :  { %597 = vmatprep.subr.bf16.mxu0 %v641_v6  ;;  %625 = vmatprep.subr.bf16.mxu1 %v641_v6 }
  0x13   :  { %598 = vmatpush3.bf16.msra.mxu0 %v641_v6  ;;  %633 = vmatpush3.bf16.msra.mxu1 %v641_v6 }
  0x14   :  { %599 = vmatprep.subr.bf16.mxu0 %v642_v7  ;;  %626 = vmatprep.subr.bf16.mxu1 %v642_v7 }
  0x17   :  { %600 = vmatpush3.bf16.msra.mxu0 %v642_v7  ;;  %634 = vmatpush3.bf16.msra.mxu1 %v642_v7 }
  0x18   :  { %601 = vmatprep.subr.bf16.mxu0 %v643_v8  ;;  %627 = vmatprep.subr.bf16.mxu1 %v643_v8 }
  0x1b   :  { %602 = vmatpush3.bf16.msra.mxu0 %v643_v8  ;;  %635 = vmatpush3.bf16.msra.mxu1 %v643_v8 }
  0x1c   :  { %603 = vmatprep.subr.bf16.mxu0 %v644_v9  ;;  %628 = vmatprep.subr.bf16.mxu1 %v644_v9 }
  0x1f   :  { %604 = vmatpush3.bf16.msra.mxu0 %v644_v9  ;;  %636 = vmatpush3.bf16.msra.mxu1 %v644_v9 }
  0x22   :  { %606 = vmatmul.mubr.bf16.vlgmr.msra.gmra.mrb[0].mxu0 %v647_v10  ;;  %614 = vmatmul.mubr.bf16.vlgmr.msra.gmra.mrb[0].mxu1 %v648_v11 }
  0x23   :  { %609 = vmatprep.mubr.bf16.mxu0 %v649_v12  ;;  %617 = vmatprep.mubr.bf16.mxu1 %v651_v13 }
  0x2a   :  { %610 = vmatmul.mubr.bf16.gmra.mrb[4].mxu0 %v650_v14  ;;  %618 = vmatmul.mubr.bf16.gmra.mrb[4].mxu1 %v652_v15 }
  0xf5   :  { %v607_v19 = vpop.f32.mrb[0].mxu0  ;;  %v615_v20 = vpop.f32.mrb[0].mxu1 }
  0xf6   :  { %v341_v21 = vadd.f32 %v607_v19, %v572_v18  ;;  %v349_v22 = vadd.f32 %v615_v20, %v572_v18  ;;  %v218_v23 = vpop.f32.mrb[1].mxu0  ;;  %v250_v24 = vpop.f32.mrb[1].mxu1 }
  0xf7   :  { %v608_v25 = vpop.f32.mrb[2].mxu0  ;;  %v616_v26 = vpop.f32.mrb[2].mxu1  ;;  %v339_v27 = vadd.f32 %v572_v18, %v218_v23  ;;  %v347_v33 = vadd.f32 %v572_v18, %v250_v24 }
  0xf8   :  { %v342_v28 = vadd.f32 %v608_v25, %v572_v18  ;;  %v221_v29 = vpop.f32.mrb[3].mxu0  ;;  %v253_v30 = vpop.f32.mrb[3].mxu1  ;;  %v368_v31 = vsel %vm357_vm0, %v349_v22, -inf  ;;  %v360_v32 = vsel %vm357_vm0, %v341_v21, -inf  ;;  %v350_v34 = vadd.f32 %v616_v26, %v572_v18 }
  0xf9   :  { %394 = vmax.xlane.f32.xlu0 %v368_v31  ;;  %378 = vmax.xlane.f32.xlu1 %v360_v32  ;;  %v358_v35 = vsel %vm357_vm0, %v339_v27, -inf  ;;  %v340_v43 = vadd.f32 %v572_v18, %v221_v29  ;;  %v348_v44 = vadd.f32 %v572_v18, %v253_v30  ;;  %v366_v45 = vsel %vm357_vm0, %v347_v33, -inf }
  0xfa   :  { %v361_v36 = vsel %vm357_vm0, %v342_v28, -inf  ;;  %v369_v46 = vsel %vm357_vm0, %v350_v34, -inf }
  0xfb   :  { %v367_v51 = vsel %vm357_vm0, %v348_v44, -inf  ;;  %v359_v52 = vsel %vm357_vm0, %v340_v43, -inf }
  0xfd   :  { %374 = vmax.xlane.f32.xlu0 %v358_v35  ;;  %380 = vmax.xlane.f32.xlu1 %v361_v36  ;;  %v611_v37 = vpop.f32.mrb[4].mxu0  ;;  %v619_v38 = vpop.f32.mrb[4].mxu1 }
  0xfe   :  { %v234_v39 = vpop.f32.mrb[5].mxu0  ;;  %v266_v40 = vpop.f32.mrb[5].mxu1  ;;  %v345_v49 = vadd.f32 %v611_v37, %v572_v18  ;;  %v353_v63 = vadd.f32 %v619_v38, %v572_v18 }
  0xff   :  { %v612_v41 = vpop.f32.mrb[6].mxu0  ;;  %v620_v42 = vpop.f32.mrb[6].mxu1  ;;  %v343_v55 = vadd.f32 %v572_v18, %v234_v39  ;;  %v351_v57 = vadd.f32 %v572_v18, %v266_v40 }
 0x100   :  { %v237_v47 = vpop.f32.mrb[7].mxu0  ;;  %v269_v48 = vpop.f32.mrb[7].mxu1  ;;  %v346_v50 = vadd.f32 %v612_v41, %v572_v18  ;;  %v364_v53 = vsel %vm357_vm0, %v345_v49, -inf  ;;  %v354_v0 = vadd.f32 %v620_v42, %v572_v18  ;;  %v827_v1 = vsel %vm357_vm0, %v353_v63, -inf }
 0x101   :  { %390 = vmax.xlane.f32.xlu0 %v366_v45  ;;  %396 = vmax.xlane.f32.xlu1 %v369_v46  ;;  %v344_v56 = vadd.f32 %v572_v18, %v237_v47  ;;  %v352_v58 = vadd.f32 %v572_v18, %v269_v48  ;;  %v362_v59 = vsel %vm357_vm0, %v343_v55, -inf  ;;  %v817_v61 = vsel %vm357_vm0, %v351_v57, -inf }
 0x102   :  { %v365_v54 = vsel %vm357_vm0, %v346_v50, -inf  ;;  %v831_v2 = vsel %vm357_vm0, %v354_v0, -inf }
 0x103   :  { %v363_v60 = vsel %vm357_vm0, %v344_v56, -inf  ;;  %v821_v62 = vsel %vm357_vm0, %v352_v58, -inf }
 0x105   :  { %392 = vmax.xlane.f32.xlu1 %v367_v51  ;;  %376 = vmax.xlane.f32.xlu0 %v359_v52 }
 0x109   :  { %386 = vmax.xlane.f32.xlu0 %v364_v53  ;;  %388 = vmax.xlane.f32.xlu1 %v365_v54 }
 0x10d   :  { %382 = vmax.xlane.f32.xlu0 %v362_v59  ;;  %384 = vmax.xlane.f32.xlu1 %v363_v60 }
 0x111   :  { %398 = vmax.xlane.f32.xlu0 %v817_v61  ;;  %400 = vmax.xlane.f32.xlu1 %v821_v62 }
 0x115   :  { %402 = vmax.xlane.f32.xlu0 %v827_v1  ;;  %404 = vmax.xlane.f32.xlu1 %v831_v2 }
 0x186   :  { %v395_v3 = vpop.xlane.xlu0 %394  ;;  %v379_v4 = vpop.xlane.xlu1 %378 }
 0x187   :  { %v835_v5 = vsub.f32 %v368_v31, %v395_v3  ;;  %v837_v6 = vsub.f32 %v360_v32, %v379_v4 }
 0x189   :  { %v426_v7 = vmul.f32 1.442695, %v837_v6  ;;  %v442_v10 = vmul.f32 1.442695, %v835_v5 }
 0x18a   :  { %v375_v8 = vpop.xlane.xlu0 %374  ;;  %v381_v9 = vpop.xlane.xlu1 %380 }
 0x18b   :  { %v841_v11 = vsub.f32 %v358_v35, %v375_v8  ;;  %v843_v12 = vsub.f32 %v361_v36, %v381_v9  ;;  %653 = vpow2.f32 %v426_v7 }
 0x18c   :  { %655 = vpow2.f32 %v442_v10 }
 0x18d   :  { %v428_v13 = vmul.f32 1.442695, %v843_v12  ;;  %v422_v16 = vmul.f32 1.442695, %v841_v11 }
 0x18e   :  { %v391_v14 = vpop.xlane.xlu0 %390  ;;  %v397_v15 = vpop.xlane.xlu1 %396 }
 0x18f   :  { %v847_v17 = vsub.f32 %v366_v45, %v391_v14  ;;  %v849_v18 = vsub.f32 %v369_v46, %v397_v15  ;;  %657 = vpow2.f32 %v428_v13 }
 0x190   :  { %659 = vpow2.f32 %v422_v16 }
 0x191   :  { %v444_v19 = vmul.f32 1.442695, %v849_v18  ;;  %v438_v22 = vmul.f32 1.442695, %v847_v17 }
 0x192   :  { %v393_v20 = vpop.xlane.xlu1 %392  ;;  %v377_v21 = vpop.xlane.xlu0 %376 }
 0x193   :  { %v853_v23 = vsub.f32 %v359_v52, %v377_v21  ;;  %661 = vpow2.f32 %v444_v19  ;;  %v855_v24 = vsub.f32 %v367_v51, %v393_v20 }
 0x194   :  { %663 = vpow2.f32 %v438_v22 }
 0x195   :  { %v424_v25 = vmul.f32 1.442695, %v853_v23  ;;  %v654_v26 = vpop.eup %653  ;;  %v440_v30 = vmul.f32 1.442695, %v855_v24 }
 0x196   :  { %v387_v27 = vpop.xlane.xlu0 %386  ;;  %v389_v28 = vpop.xlane.xlu1 %388  ;;  %458 = vadd.xlane.f32.xlu0 %v654_v26 }
 0x197   :  { %v858_v29 = vsub.f32 %v364_v53, %v387_v27  ;;  %665 = vpow2.f32 %v424_v25  ;;  %v861_v31 = vsub.f32 %v365_v54, %v389_v28  ;;  %v656_v32 = vpop.eup %655 }
 0x199   :  { %v434_v33 = vmul.f32 1.442695, %v858_v29  ;;  %v658_v34 = vpop.eup %657  ;;  %v436_v38 = vmul.f32 1.442695, %v861_v31 }
 0x19a   :  { %v383_v35 = vpop.xlane.xlu0 %382  ;;  %v385_v36 = vpop.xlane.xlu1 %384  ;;  %474 = vadd.xlane.f32.xlu0 %v656_v32  ;;  %460 = vadd.xlane.f32.xlu1 %v658_v34 }
 0x19b   :  { %667 = vpow2.f32 %v434_v33  ;;  %v864_v37 = vsub.f32 %v362_v59, %v383_v35  ;;  %v867_v39 = vsub.f32 %v363_v60, %v385_v36  ;;  %v660_v40 = vpop.eup %659 }
 0x19c   :  { %669 = vpow2.f32 %v440_v30 }
 0x19d   :  { %v430_v41 = vmul.f32 1.442695, %v864_v37  ;;  %v662_v42 = vpop.eup %661  ;;  %v432_v46 = vmul.f32 1.442695, %v867_v39 }
 0x19e   :  { %v399_v43 = vpop.xlane.xlu0 %398  ;;  %v401_v44 = vpop.xlane.xlu1 %400  ;;  %454 = vadd.xlane.f32.xlu0 %v660_v40  ;;  %476 = vadd.xlane.f32.xlu1 %v662_v42 }
 0x19f   :  { %671 = vpow2.f32 %v430_v41  ;;  %v871_v45 = vsub.f32 %v817_v61, %v399_v43  ;;  %v875_v47 = vsub.f32 %v821_v62, %v401_v44  ;;  %v664_v48 = vpop.eup %663 }
 0x1a0   :  { %673 = vpow2.f32 %v436_v38 }
 0x1a1   :  { %v446_v49 = vmul.f32 1.442695, %v871_v45  ;;  %v666_v50 = vpop.eup %665  ;;  %v448_v54 = vmul.f32 1.442695, %v875_v47 }
 0x1a2   :  { %v403_v51 = vpop.xlane.xlu0 %402  ;;  %v405_v52 = vpop.xlane.xlu1 %404  ;;  %470 = vadd.xlane.f32.xlu0 %v664_v48  ;;  %456 = vadd.xlane.f32.xlu1 %v666_v50 }
 0x1a3   :  { %675 = vpow2.f32 %v446_v49  ;;  %v879_v53 = vsub.f32 %v827_v1, %v403_v51  ;;  %v883_v55 = vsub.f32 %v831_v2, %v405_v52 }
 0x1a4   :  { %677 = vpow2.f32 %v432_v46 }
 0x1a5   :  { %v668_v56 = vpop.eup %667  ;;  %v450_v57 = vmul.f32 1.442695, %v879_v53  ;;  %v452_v59 = vmul.f32 1.442695, %v883_v55 }
 0x1a6   :  { %v670_v58 = vpop.eup %669  ;;  %466 = vadd.xlane.f32.xlu0 %v668_v56 }
 0x1a7   :  { %679 = vpow2.f32 %v450_v57  ;;  %472 = vadd.xlane.f32.xlu1 %v670_v58 }
 0x1a8   :  { %681 = vpow2.f32 %v448_v54 }
 0x1a9   :  { %v672_v60 = vpop.eup %671  ;;  %683 = vpow2.f32 %v452_v59 }
 0x1aa   :  { %v674_v61 = vpop.eup %673  ;;  %462 = vadd.xlane.f32.xlu0 %v672_v60 }
 0x1ab   :  { %468 = vadd.xlane.f32.xlu1 %v674_v61 }
 0x1ad   :  { %v676_v62 = vpop.eup %675 }
 0x1ae   :  { %v678_v63 = vpop.eup %677  ;;  %478 = vadd.xlane.f32.xlu0 %v676_v62 }
 0x1af   :  { %464 = vadd.xlane.f32.xlu1 %v678_v63 }
 0x1b1   :  { %v680_v0 = vpop.eup %679 }
 0x1b2   :  { %v682_v1 = vpop.eup %681  ;;  %482 = vadd.xlane.f32.xlu0 %v680_v0 }
 0x1b3   :  { %480 = vadd.xlane.f32.xlu1 %v682_v1  ;;  %v684_v2 = vpop.eup %683 }
 0x1b7   :  { %484 = vadd.xlane.f32.xlu1 %v684_v2 }
 0x223   :  { %v459_v3 = vpop.xlane.xlu0 %458 }
 0x224   :  { %685 = vlog2.f32 %v459_v3 }
 0x227   :  { %v475_v4 = vpop.xlane.xlu0 %474  ;;  %v461_v7 = vpop.xlane.xlu1 %460 }
 0x228   :  { %687 = vlog2.f32 %v475_v4 }
 0x229   :  { %689 = vlog2.f32 %v461_v7 }
 0x22b   :  { %v455_v8 = vpop.xlane.xlu0 %454  ;;  %v477_v9 = vpop.xlane.xlu1 %476 }
 0x22c   :  { %691 = vlog2.f32 %v455_v8 }
 0x22d   :  { %693 = vlog2.f32 %v477_v9 }
 0x22e   :  { %v686_v10 = vpop.eup %685 }
 0x22f   :  { %v491_v13 = vmul.f32 0.6931472, %v686_v10  ;;  %v471_v14 = vpop.xlane.xlu0 %470  ;;  %v457_v15 = vpop.xlane.xlu1 %456 }
 0x230   :  { %695 = vlog2.f32 %v471_v14 }
 0x231   :  { %v520_v16 = vsub.f32 %v837_v6, %v491_v13  ;;  %697 = vlog2.f32 %v457_v15 }
 0x232   :  { %v688_v19 = vpop.eup %687 }
 0x233   :  { %v690_v20 = vpop.eup %689  ;;  %536 = vst [vmem:[%s954_s3 + $0x10] sm:$0xff] %v520_v16  ;;  %v507_v21 = vmul.f32 0.6931472, %v688_v19  ;;  %v467_v22 = vpop.xlane.xlu0 %466 }
 0x234   :  { %v473_v25 = vpop.xlane.xlu1 %472  ;;  %v493_v26 = vmul.f32 0.6931472, %v690_v20  ;;  %699 = vlog2.f32 %v467_v22 }
 0x235   :  { %v528_v27 = vsub.f32 %v835_v5, %v507_v21  ;;  %701 = vlog2.f32 %v473_v25 }
 0x236   :  { %v692_v28 = vpop.eup %691  ;;  %v521_v30 = vsub.f32 %v843_v12, %v493_v26 }
 0x237   :  { %v694_v32 = vpop.eup %693  ;;  %544 = vst [vmem:[%s954_s3 + $0x50] sm:$0xff] %v528_v27  ;;  %v487_v6 = vmul.f32 0.6931472, %v692_v28  ;;  %v463_v33 = vpop.xlane.xlu0 %462 }
 0x238   :  { %v469_v34 = vpop.xlane.xlu1 %468  ;;  %537 = vst [vmem:[%s954_s3 + $0x18] sm:$0xff] %v521_v30  ;;  %v509_v35 = vmul.f32 0.6931472, %v694_v32  ;;  %703 = vlog2.f32 %v463_v33 }
 0x239   :  { %v518_v5 = vsub.f32 %v841_v11, %v487_v6  ;;  %705 = vlog2.f32 %v469_v34 }
 0x23a   :  { %v696_v36 = vpop.eup %695  ;;  %v529_v12 = vsub.f32 %v849_v18, %v509_v35 }
 0x23b   :  { %v698_v38 = vpop.eup %697  ;;  %534 = vst [vmem:[%s954_s3] sm:$0xff] %v518_v5  ;;  %v503_v40 = vmul.f32 0.6931472, %v696_v36  ;;  %v479_v41 = vpop.xlane.xlu0 %478 }
 0x23c   :  { %v465_v42 = vpop.xlane.xlu1 %464  ;;  %545 = vst [vmem:[%s954_s3 + $0x58] sm:$0xff] %v529_v12  ;;  %v489_v43 = vmul.f32 0.6931472, %v698_v38  ;;  %707 = vlog2.f32 %v479_v41 }
 0x23d   :  { %v526_v11 = vsub.f32 %v847_v17, %v503_v40  ;;  %709 = vlog2.f32 %v465_v42 }
 0x23e   :  { %v700_v44 = vpop.eup %699  ;;  %v519_v18 = vsub.f32 %v853_v23, %v489_v43 }
 0x23f   :  { %v702_v46 = vpop.eup %701  ;;  %542 = vst [vmem:[%s954_s3 + $0x40] sm:$0xff] %v526_v11  ;;  %v499_v48 = vmul.f32 0.6931472, %v700_v44  ;;  %v483_v49 = vpop.xlane.xlu0 %482 }
 0x240   :  { %v481_v50 = vpop.xlane.xlu1 %480  ;;  %535 = vst [vmem:[%s954_s3 + $0x8] sm:$0xff] %v519_v18  ;;  %v505_v51 = vmul.f32 0.6931472, %v702_v46  ;;  %711 = vlog2.f32 %v483_v49 }
 0x241   :  { %v524_v17 = vsub.f32 %v858_v29, %v499_v48  ;;  %713 = vlog2.f32 %v481_v50 }
 0x242   :  { %v704_v52 = vpop.eup %703  ;;  %v527_v23 = vsub.f32 %v855_v24, %v505_v51 }
 0x243   :  { %v706_v54 = vpop.eup %705  ;;  %540 = vst [vmem:[%s954_s3 + $0x30] sm:$0xff] %v524_v17  ;;  %v495_v56 = vmul.f32 0.6931472, %v704_v52 }
 0x244   :  { %v485_v57 = vpop.xlane.xlu1 %484  ;;  %543 = vst [vmem:[%s954_s3 + $0x48] sm:$0xff] %v527_v23  ;;  %v501_v58 = vmul.f32 0.6931472, %v706_v54 }
 0x245   :  { %715 = vlog2.f32 %v485_v57  ;;  %v522_v59 = vsub.f32 %v864_v37, %v495_v56 }
 0x246   :  { %v708_v29 = vpop.eup %707  ;;  %v525_v60 = vsub.f32 %v861_v31, %v501_v58 }
 0x247   :  { %v710_v61 = vpop.eup %709  ;;  %538 = vst [vmem:[%s954_s3 + $0x20] sm:$0xff] %v522_v59  ;;  %v511_v24 = vmul.f32 0.6931472, %v708_v29 }
 0x248   :  { %541 = vst [vmem:[%s954_s3 + $0x38] sm:$0xff] %v525_v60  ;;  %v497_v62 = vmul.f32 0.6931472, %v710_v61 }
 0x249   :  { %v530_v63 = vsub.f32 %v871_v45, %v511_v24 }
 0x24a   :  { %v712_v0 = vpop.eup %711  ;;  %v523_v1 = vsub.f32 %v867_v39, %v497_v62 }
 0x24b   :  { %v714_v37 = vpop.eup %713  ;;  %546 = vst [vmem:[%s954_s3 + $0x60] sm:$0xff] %v530_v63  ;;  %v515_v31 = vmul.f32 0.6931472, %v712_v0 }
 0x24c   :  { %539 = vst [vmem:[%s954_s3 + $0x28] sm:$0xff] %v523_v1  ;;  %v513_v2 = vmul.f32 0.6931472, %v714_v37 }
 0x24d   :  { %v532_v3 = vsub.f32 %v879_v53, %v515_v31 }
 0x24e   :  { %v531_v7 = vsub.f32 %v875_v47, %v513_v2 }
 0x24f   :  { %v716_v4 = vpop.eup %715  ;;  %548 = vst [vmem:[%s954_s3 + $0x70] sm:$0xff] %v532_v3 }
 0x250   :  { %v517_v39 = vmul.f32 0.6931472, %v716_v4  ;;  %547 = vst [vmem:[%s954_s3 + $0x68] sm:$0xff] %v531_v7 }
 0x252   :  { %v533_v45 = vsub.f32 %v883_v55, %v517_v39 }
 0x254   :  { %549 = vst [vmem:[%s954_s3 + $0x78] sm:$0xff] %v533_v45 }

</bundles_post_ra>
